<compile_context>
chip_gen: v7x
topology: tpu7x:2x2x1
jax: 0.10.0
libtpu: 0.0.40
codegen_flags: <defaults>
</compile_context>

<pallas_src>
import functools

import jax
import jax.numpy as jnp
from jax.experimental import pallas as pl
from jax.experimental.pallas import tpu as pltpu

LANE = 128
SUBLANE = 8


def _round_up(n, m):
    return ((n + m - 1) // m) * m


def qnetwork_kernel(x_ref, w1_ref, b1_ref, w2_ref, b2_ref, out_ref):
    # x_ref : (Bt, D_in)  bf16      w1_ref: (D_in, H)   bf16
    # b1_ref: (1, H)      f32       w2_ref: (H, N_pad)  bf16
    # b2_ref: (1, N_pad)  f32       out_ref:(Bt, N_pad) f32
    h = jnp.dot(x_ref[...], w1_ref[...], preferred_element_type=jnp.float32)
    h = jnp.maximum(h + b1_ref[...], 0.0)        # bias + ReLU in f32 (VPU)
    h = h.astype(w2_ref.dtype)                   # bf16 back into the MXU
    o = jnp.dot(h, w2_ref[...], preferred_element_type=jnp.float32)
    out_ref[...] = o + b2_ref[...]


@functools.partial(jax.jit, static_argnames=("block_b",))
def qnetwork_forward(x, w1, b1, w2, b2, *, block_b=256):
    """Fused MLP forward. x: (B, D_in) f32 -> (B, D_out) f32."""
    B, D_in = x.shape
    H = w1.shape[1]
    D_out = w2.shape[1]

    # --- Lane-dense output: pad the second-layer width up to a multiple of 128.
    N_pad = _round_up(D_out, LANE)
    w2p = jnp.zeros((H, N_pad), w2.dtype).at[:, :D_out].set(w2)
    b2p = jnp.zeros((1, N_pad), b2.dtype).at[:, :D_out].set(jnp.reshape(b2, (1, D_out)))

    # --- Batch tiling: grid over batch; weights/biases resident across steps.
    bt = min(block_b, _round_up(B, SUBLANE))
    bt = _round_up(bt, SUBLANE)
    B_pad = _round_up(B, bt)
    if B_pad != B:
        x = jnp.pad(x, ((0, B_pad - B), (0, 0)))
    num_tiles = B_pad // bt

    # --- bf16 operands for the MXU (f32 accumulate inside the kernel).
    xb = x.astype(jnp.bfloat16)
    w1b = w1.astype(jnp.bfloat16)
    w2b = w2p.astype(jnp.bfloat16)
    b1f = jnp.reshape(b1, (1, H)).astype(jnp.float32)
    b2f = b2p.astype(jnp.float32)

    out = pl.pallas_call(
        qnetwork_kernel,
        out_shape=jax.ShapeDtypeStruct((B_pad, N_pad), jnp.float32),
        grid=(num_tiles,),
        in_specs=[
            pl.BlockSpec((bt, D_in), lambda i: (i, 0)),   # x tile: pipelined per step
            pl.BlockSpec((D_in, H), lambda i: (0, 0)),    # W1: fetched once, resident
            pl.BlockSpec((1, H), lambda i: (0, 0)),       # b1
            pl.BlockSpec((H, N_pad), lambda i: (0, 0)),   # W2 (lane-padded)
            pl.BlockSpec((1, N_pad), lambda i: (0, 0)),   # b2 (lane-padded)
        ],
        out_specs=pl.BlockSpec((bt, N_pad), lambda i: (i, 0)),
        compiler_params=pltpu.CompilerParams(
            # Batch steps are independent -> shard across TensorCores (v7x).
            dimension_semantics=("parallel",),
        ),
    )(xb, w1b, b1f, w2b, b2f)

    return out[:B, :D_out]


def init_qnetwork_params(key, input_dim, output_dim, hidden_dim=128):
    """Mimics PyTorch nn.Linear default init: U(-1/sqrt(fan_in), 1/sqrt(fan_in))."""
    k1, k2, k3, k4 = jax.random.split(key, 4)
    bound1 = 1.0 / jnp.sqrt(input_dim)
    bound2 = 1.0 / jnp.sqrt(hidden_dim)
    w1 = jax.random.uniform(k1, (input_dim, hidden_dim), jnp.float32, -bound1, bound1)
    b1 = jax.random.uniform(k2, (1, hidden_dim), jnp.float32, -bound1, bound1)
    w2 = jax.random.uniform(k3, (hidden_dim, output_dim), jnp.float32, -bound2, bound2)
    b2 = jax.random.uniform(k4, (1, output_dim), jnp.float32, -bound2, bound2)
    return w1, b1, w2, b2


if __name__ == "__main__":
    # Small shapes consistent with the module: batch=8, input_dim=32,
    # hidden_dim=128 (module default), output_dim=4 (e.g. 4 actions).
    B, D_IN, H, D_OUT = 8, 32, 128, 4

    key = jax.random.PRNGKey(0)
    kx, kp = jax.random.split(key)
    x = jax.random.normal(kx, (B, D_IN), jnp.float32)
    w1, b1, w2, b2 = init_qnetwork_params(kp, D_IN, D_OUT, hidden_dim=H)

    out = qnetwork_forward(x, w1, b1, w2, b2)
    out = jax.block_until_ready(out)
    assert out.shape == (B, D_OUT)

    # Reference faithful to the kernel's bf16-operand / f32-accumulate matmuls.
    xb = x.astype(jnp.bfloat16).astype(jnp.float32)
    w1b = w1.astype(jnp.bfloat16).astype(jnp.float32)
    w2b = w2.astype(jnp.bfloat16).astype(jnp.float32)
    h_ref = jnp.maximum(xb @ w1b + b1, 0.0)
    ref_bf16 = h_ref.astype(jnp.bfloat16).astype(jnp.float32) @ w2b + b2
    assert jnp.allclose(out, ref_bf16, atol=1e-3, rtol=1e-3)

    # Loose check against the full-f32 PyTorch-equivalent math.
    ref_f32 = jnp.maximum(x @ w1 + b1, 0.0) @ w2 + b2
    assert jnp.allclose(out, ref_f32, atol=5e-2, rtol=5e-2)

    print("KERNEL_OK")
</pallas_src>

<mosaic_0001>
module attributes {stable_mosaic.version = 11 : i64} {
  func.func @qnetwork_kernel(%arg0: i32, %arg1: memref<8x32xbf16, #tpu.memory_space<vmem>>, %arg2: memref<32x128xbf16, #tpu.memory_space<vmem>>, %arg3: memref<1x128xf32, #tpu.memory_space<vmem>>, %arg4: memref<128x128xbf16, #tpu.memory_space<vmem>>, %arg5: memref<1x128xf32, #tpu.memory_space<vmem>>, %arg6: memref<8x128xf32, #tpu.memory_space<vmem>>) attributes {dimension_semantics = [#tpu.dimension_semantics<parallel>], iteration_bounds = array<i64: 1>, scalar_prefetch = 0 : i64, scratch_operands = 0 : i64, tpu.core_type = #tpu.core_type<tc>, window_params = [{transform_indices = @transform_0, window_bounds = array<i64: 8, 32>}, {pipeline_mode = #tpu.pipeline_mode<synchronous>, transform_indices = @transform_1, window_bounds = array<i64: 32, 128>}, {pipeline_mode = #tpu.pipeline_mode<synchronous>, transform_indices = @transform_2, window_bounds = array<i64: 1, 128>}, {pipeline_mode = #tpu.pipeline_mode<synchronous>, transform_indices = @transform_3, window_bounds = array<i64: 128, 128>}, {pipeline_mode = #tpu.pipeline_mode<synchronous>, transform_indices = @transform_4, window_bounds = array<i64: 1, 128>}, {transform_indices = @transform_5, window_bounds = array<i64: 8, 128>}]} {
    %c0 = arith.constant 0 : index
    %c0_0 = arith.constant 0 : index
    %0 = vector.load %arg1[%c0, %c0_0] : memref<8x32xbf16, #tpu.memory_space<vmem>>, vector<8x32xbf16>
    %c0_1 = arith.constant 0 : index
    %c0_2 = arith.constant 0 : index
    %1 = vector.load %arg2[%c0_1, %c0_2] : memref<32x128xbf16, #tpu.memory_space<vmem>>, vector<32x128xbf16>
    %cst = arith.constant dense<0.000000e+00> : vector<8x128xf32>
    %2 = tpu.matmul %0, %1, %cst {dimension_numbers = #tpu.dot_dimension_numbers<[1], [0], [0], [1], [0, 0, 1, 1], [], []>} : vector<8x32xbf16>, vector<32x128xbf16>, vector<8x128xf32> -> vector<8x128xf32>
    %c0_3 = arith.constant 0 : index
    %c0_4 = arith.constant 0 : index
    %3 = vector.load %arg3[%c0_3, %c0_4] : memref<1x128xf32, #tpu.memory_space<vmem>>, vector<1x128xf32>
    %4 = vector.broadcast %3 : vector<1x128xf32> to vector<8x128xf32>
    %5 = arith.addf %2, %4 : vector<8x128xf32>
    %cst_5 = arith.constant 0.000000e+00 : f32
    %6 = vector.broadcast %cst_5 : f32 to vector<8x128xf32>
    %7 = arith.maximumf %5, %6 : vector<8x128xf32>
    %8 = arith.truncf %7 : vector<8x128xf32> to vector<8x128xbf16>
    %c0_6 = arith.constant 0 : index
    %c0_7 = arith.constant 0 : index
    %9 = vector.load %arg4[%c0_6, %c0_7] : memref<128x128xbf16, #tpu.memory_space<vmem>>, vector<128x128xbf16>
    %cst_8 = arith.constant dense<0.000000e+00> : vector<8x128xf32>
    %10 = tpu.matmul %8, %9, %cst_8 {dimension_numbers = #tpu.dot_dimension_numbers<[1], [0], [0], [1], [0, 0, 1, 1], [], []>} : vector<8x128xbf16>, vector<128x128xbf16>, vector<8x128xf32> -> vector<8x128xf32>
    %c0_9 = arith.constant 0 : index
    %c0_10 = arith.constant 0 : index
    %11 = vector.load %arg5[%c0_9, %c0_10] : memref<1x128xf32, #tpu.memory_space<vmem>>, vector<1x128xf32>
    %12 = vector.broadcast %11 : vector<1x128xf32> to vector<8x128xf32>
    %13 = arith.addf %10, %12 : vector<8x128xf32>
    %c0_11 = arith.constant 0 : index
    %c0_12 = arith.constant 0 : index
    %14 = vector.load %arg6[%c0_11, %c0_12] : memref<8x128xf32, #tpu.memory_space<vmem>>, vector<8x128xf32>
    tpu.vector_store %arg6[%c0_11, %c0_12], %13 {strides = array<i32>} : memref<8x128xf32, #tpu.memory_space<vmem>>, vector<8x128xf32>,
    return
  }
  func.func @transform_0(%arg0: i32) -> (i32, i32) {
    %c0_i32 = arith.constant 0 : i32
    %c0_i32_0 = arith.constant 0 : i32
    return %arg0, %c0_i32 : i32, i32
  }
  func.func @transform_1(%arg0: i32) -> (i32, i32) {
    %c0_i32 = arith.constant 0 : i32
    %c0_i32_0 = arith.constant 0 : i32
    %c0_i32_1 = arith.constant 0 : i32
    return %c0_i32, %c0_i32_0 : i32, i32
  }
  func.func @transform_2(%arg0: i32) -> (i32, i32) {
    %c0_i32 = arith.constant 0 : i32
    %c0_i32_0 = arith.constant 0 : i32
    %c0_i32_1 = arith.constant 0 : i32
    return %c0_i32, %c0_i32_0 : i32, i32
  }
  func.func @transform_3(%arg0: i32) -> (i32, i32) {
    %c0_i32 = arith.constant 0 : i32
    %c0_i32_0 = arith.constant 0 : i32
    %c0_i32_1 = arith.constant 0 : i32
    return %c0_i32, %c0_i32_0 : i32, i32
  }
  func.func @transform_4(%arg0: i32) -> (i32, i32) {
    %c0_i32 = arith.constant 0 : i32
    %c0_i32_0 = arith.constant 0 : i32
    %c0_i32_1 = arith.constant 0 : i32
    return %c0_i32, %c0_i32_0 : i32, i32
  }
  func.func @transform_5(%arg0: i32) -> (i32, i32) {
    %c0_i32 = arith.constant 0 : i32
    %c0_i32_0 = arith.constant 0 : i32
    return %arg0, %c0_i32 : i32, i32
  }
}

</mosaic_0001>

<bundles_post_ra>
// kernel: qnetwork_forward.1
= control target key start
LH: loop header
LB: loop body
LE: loop exit
PB: predicated region body
PF: predicated region fallthrough
CT: control target
= control target key end

     0   :  { %v272_v0 = vmov 0.0   ;;  %vm273_vm0 = vmmov 0   ;;  %vm45_vm1 = vcmask 261120   ;;  %s346_s1 = inlined_call_operand.vmem [shape: bf16[32,128], index: 1, kind: input, shape index: {}]   ;;  %s347_s3 = inlined_call_operand.vmem [shape: bf16[128,128], index: 3, kind: input, shape index: {}]   ;;  %s348_s0 = inlined_call_operand.vmem [shape: bf16[8,32], index: 0, kind: input, shape index: {}]   ;;  %s349_s2 = inlined_call_operand.vmem [shape: f32[1,128], index: 2, kind: input, shape index: {}]   ;;  %s350_s4 = inlined_call_operand.vmem [shape: f32[1,128], index: 4, kind: input, shape index: {}]   ;;  %s351_s5 = inlined_call_operand.vmem [shape: f32[8,128], index: 5, kind: output, shape index: {}]  }
   0x1   :  { %232 = vmatprep.subr.bf16.mxu0 %v272_v0  ;;  %v262_v1 = vld [vmem:[%s346_s1] sm:$0xff]   ;;  %236 = vmatprep.mubr.msk.bf16.mxu0 %vm273_vm0, %v272_v0  ;;  %v263_v2 = vld [vmem:[%s346_s1 + $0x8] sm:$0xff]   ;;  %v266_v6 = vld [vmem:[%s347_s3 + $0x10] sm:$0xff]  }
   0x2   :  { %240 = vmatprep.subr.bf16.mxu1 %v272_v0  ;;  %256 = vmatprep.mubr.msk.bf16.mxu1 %vm273_vm0, %v272_v0  ;;  %v264_v3 = vld [vmem:[%s347_s3] sm:$0xff]   ;;  %v265_v4 = vld [vmem:[%s347_s3 + $0x8] sm:$0xff]   ;;  %v267_v7 = vld [vmem:[%s347_s3 + $0x18] sm:$0xff]  }
   0x3   :  { %233 = vmatpush3.bf16.msra.mxu0 %v262_v1  ;;  %241 = vmatpush3.bf16.msra.mxu1 %v264_v3  ;;  %v21_v5 = vld [vmem:[%s348_s0] sm:$0xf]  ;;  %v269_v9 = vld [vmem:[%s347_s3 + $0x28] sm:$0xff]   ;;  %v270_v10 = vld [vmem:[%s347_s3 + $0x30] sm:$0xff]  }
   0x4   :  { %234 = vmatprep.subr.bf16.mxu0 %v272_v0  ;;  %242 = vmatprep.subr.bf16.mxu1 %v272_v0  ;;  %v268_v8 = vld [vmem:[%s347_s3 + $0x20] sm:$0xff]   ;;  %v271_v11 = vld [vmem:[%s347_s3 + $0x38] sm:$0xff]  }
   0x5   :  { %v207_v12 = vld [vmem:[%s349_s2] ss:$0 sm:$0xff] }
   0x6   :  { %v211_v20 = vld [vmem:[%s350_s4] ss:$0 sm:$0xff] }
   0x7   :  { %235 = vmatpush3.bf16.msra.mxu0 %v263_v2  ;;  %243 = vmatpush3.bf16.msra.mxu1 %v265_v4 }
   0x8   :  { %244 = vmatprep.subr.bf16.mxu1 %v272_v0 }
   0xa   :  { %237 = vmatmul.mubr.msk.bf16.vlgmr.msra.gmra.mrb[0].mxu0 %vm45_vm1, %v21_v5 }
   0xb   :  { %245 = vmatpush3.bf16.msra.mxu1 %v266_v6 }
   0xc   :  { %246 = vmatprep.subr.bf16.mxu1 %v272_v0 }
   0xf   :  { %247 = vmatpush3.bf16.msra.mxu1 %v267_v7 }
  0x10   :  { %248 = vmatprep.subr.bf16.mxu1 %v272_v0 }
  0x13   :  { %249 = vmatpush3.bf16.msra.mxu1 %v268_v8 }
  0x14   :  { %250 = vmatprep.subr.bf16.mxu1 %v272_v0 }
  0x17   :  { %251 = vmatpush3.bf16.msra.mxu1 %v269_v9 }
  0x18   :  { %252 = vmatprep.subr.bf16.mxu1 %v272_v0 }
  0x1b   :  { %253 = vmatpush3.bf16.msra.mxu1 %v270_v10 }
  0x1c   :  { %254 = vmatprep.subr.bf16.mxu1 %v272_v0 }
  0x1f   :  { %255 = vmatpush3.bf16.msra.mxu1 %v271_v11 }
  0xdd   :  { %v83_v13 = vpop.f32.mrb[0].mxu0 }
  0xde   :  { %v84_v14 = vadd.f32 %v207_v12, %v83_v13  ;;  %v238_v15 = vpop.f32.mrb[1].mxu0 }
  0xdf   :  { %v86_v16 = vpop.f32.mrb[2].mxu0 }
  0xe0   :  { %v89_v17 = vmax.f32 %v84_v14, 0.0  ;;  %v239_v18 = vpop.f32.mrb[3].mxu0 }
  0xe2   :  { %v90_v19 = vpack.c.bf16 %v89_v17, %v89_v17 }
  0xe4   :  { %257 = vmatmul.mubr.bf16.vlgmr.msra.gmra.mrb[0].mxu1 %v90_v19 }
 0x1b7   :  { %v196_v21 = vpop.f32.mrb[0].mxu1 }
 0x1b8   :  { %v197_v22 = vadd.f32 %v211_v20, %v196_v21  ;;  %v258_v23 = vpop.f32.mrb[1].mxu1 }
 0x1b9   :  { %v199_v24 = vpop.f32.mrb[2].mxu1 }
 0x1ba   :  { %202 = vst [vmem:[%s351_s5] sm:$0xff] %v197_v22  ;;  %v259_v25 = vpop.f32.mrb[3].mxu1 }

</bundles_post_ra>
